<compile_context>
chip_gen: v5e
topology: v5e:2x2
jax: 0.10.0
libtpu: 0.0.40
codegen_flags: <defaults>
</compile_context>

<pallas_src>
import functools
import math

import numpy as np
import jax
import jax.numpy as jnp
from jax.experimental import pallas as pl
from jax.experimental.pallas import tpu as pltpu


def _round_up(x, m):
    return (x + m - 1) // m * m


# ----------------------------------------------------------------------------
# Kernel 1: bias-free linear projection  y = x @ W
# W is already [Hin, Dp]: pre-transposed, folded with any preceding static
# matmul (patch / frame embed), and zero-padded to Dp (multiple of 128) lanes.
# ----------------------------------------------------------------------------
def _proj_kernel(x_ref, w_ref, o_ref):
    o_ref[...] = jnp.dot(x_ref[...], w_ref[...],
                         preferred_element_type=jnp.float32).astype(o_ref.dtype)


def linear_projection(x, w):
    """x: [N, S, Hin]; w: [Hin, Dp] (prepared) -> [N, S, Dp]."""
    N, S, Hin = x.shape
    Dp = w.shape[1]
    M = N * S
    # Large row tile; pad M rather than asserting divisibility.
    tm = min(256, _round_up(M, 8))
    Mp = _round_up(M, tm)
    x2 = x.reshape(M, Hin)
    if Mp != M:
        x2 = jnp.pad(x2, ((0, Mp - M), (0, 0)))
    # TODO(synk): at production sizes mark the constant weight block
    # pipeline_mode=pl.Buffered(1) to avoid double-buffering it in VMEM.
    out = pl.pallas_call(
        _proj_kernel,
        out_shape=jax.ShapeDtypeStruct((Mp, Dp), jnp.float32),
        grid=(Mp // tm,),
        in_specs=[pl.BlockSpec((tm, Hin), lambda i: (i, 0)),
                  pl.BlockSpec((Hin, Dp), lambda i: (0, 0))],
        out_specs=pl.BlockSpec((tm, Dp), lambda i: (i, 0)),
        compiler_params=pltpu.CompilerParams(dimension_semantics=("parallel",)),
    )(x2, w)
    return out[:M].reshape(N, S, Dp)


# ----------------------------------------------------------------------------
# Kernel 2: the WHOLE fusion stack (L BertSelfAttention cross-attn layers,
# is_decoder=True, K/V from text, mask = extended text mask, eval mode so
# attention dropout is identity).  One grid step processes `nb` batch
# elements through all L layers; hidden states live in a VMEM scratch across
# layers; only the final CLS row is written back to HBM.
# ----------------------------------------------------------------------------
def _fusion_stack_kernel(h_ref, t_ref, m_ref, w_ref, b_ref, o_ref, hid_ref, *,
                         num_layers, num_heads, d_model, compute_dtype):
    nb, Sv, Dp = h_ref.shape
    St = t_ref.shape[1]
    D = d_model
    H = num_heads
    hd = D // H
    scale = 1.0 / math.sqrt(hd)
    cd = compute_dtype   # keep jnp.float32 here; switch to bf16 on v6e/v7x prod

    hid_ref[...] = h_ref[...]
    # Text K/V source loaded & flattened ONCE for all layers of this block.
    t2 = t_ref[...].reshape(nb * St, Dp).astype(cd)

    pad_width = Dp - D
    zeros_pad = (jnp.zeros((Sv, pad_width), dtype=jnp.float32)
                 if pad_width else None)

    def split_heads(x):
        # [s, D] -> [H, s, hd]; layout-only (lane slices stacked on a leading
        # axis) — all matmul/softmax compute below is heads-batched.
        return jnp.stack([x[:, h * hd:(h + 1) * hd] for h in range(H)], axis=0)

    for l in range(num_layers):                # static unroll over layers
        h2 = hid_ref[...].reshape(nb * Sv, Dp).astype(cd)
        # One Q/K/V projection per layer for the whole batch block (taller
        # MXU LHS tiles).  TODO(synk): at small D the per-layer K/V dots can
        # additionally be fused into one wide matmul over all layers.
        q_all = jnp.dot(h2, w_ref[3 * l + 0].astype(cd),
                        preferred_element_type=jnp.float32) + b_ref[3 * l + 0]
        k_all = jnp.dot(t2, w_ref[3 * l + 1].astype(cd),
                        preferred_element_type=jnp.float32) + b_ref[3 * l + 1]
        v_all = jnp.dot(t2, w_ref[3 * l + 2].astype(cd),
                        preferred_element_type=jnp.float32) + b_ref[3 * l + 2]

        for b in range(nb):                    # static unroll over batch block
            q = q_all[b * Sv:(b + 1) * Sv]     # [Sv, D]
            k = k_all[b * St:(b + 1) * St]     # [St, D]
            v = v_all[b * St:(b + 1) * St]     # [St, D]
            qh = split_heads(q)                # [H, Sv, hd]
            kh = split_heads(k)                # [H, St, hd]
            vh = split_heads(v)                # [H, St, hd]

            # All heads in one batched contraction (no per-head matmuls).
            s = jnp.einsum("hqd,hkd->hqk", qh.astype(cd), kh.astype(cd),
                           preferred_element_type=jnp.float32) * scale
            s = s + m_ref[b]                   # [1, St] additive mask broadcasts
            s = s - jnp.max(s, axis=-1, keepdims=True)
            e = jnp.exp(s)
            # One divide per row (hoisted) instead of a per-element divide.
            inv = 1.0 / jnp.sum(e, axis=-1, keepdims=True)
            p = e * inv
            c = jnp.einsum("hqk,hkd->hqd", p.astype(cd), vh.astype(cd),
                           preferred_element_type=jnp.float32)   # [H, Sv, hd]

            ctx = jnp.concatenate([c[h] for h in range(H)], axis=-1)  # [Sv, D]
            if zeros_pad is not None:          # keep lanes beyond D at zero
                ctx = jnp.concatenate([ctx, zeros_pad], axis=-1)      # [Sv, Dp]
            hid_ref[b] = ctx.astype(hid_ref.dtype)

    # Only the CLS row of the final hidden feeds the module's return value,
    # so only that row is written back (lane-dense [nb, 1, Dp] store).
    h_final = hid_ref[...]
    o_ref[...] = h_final[:, 0:1, :].astype(o_ref.dtype)


def _pick_batch_block(n, max_nb=8):
    """Largest divisor of n <= min(max_nb, n//2): several batch elements per
    grid step (amortise ~0.35us/step) while keeping grid extent >= 2 so v7x's
    two TensorCores both get work."""
    cap = max(1, min(max_nb, n // 2))
    for nb in range(cap, 0, -1):
        if n % nb == 0:
            return nb
    return 1


def fusion_stack(hidden, text, ext_mask, w_fusion, b_fusion, num_heads,
                 d_model, compute_dtype=jnp.float32):
    """hidden: [N, Sv, Dp] (query source), text: [N, St_p, Dp] (key/value
    source, St_p padded to a lane multiple), ext_mask: [N, 1, St_p] additive,
    w_fusion: [3L, Dp, D], b_fusion: [3L, 1, D].  Returns CLS rows [N, 1, Dp]
    of the final layer."""
    N, Sv, Dp = hidden.shape
    St_p = text.shape[1]
    L = w_fusion.shape[0] // 3
    nb = _pick_batch_block(N)
    kernel = functools.partial(_fusion_stack_kernel, num_layers=L,
                               num_heads=num_heads, d_model=d_model,
                               compute_dtype=compute_dtype)
    return pl.pallas_call(
        kernel,
        out_shape=jax.ShapeDtypeStruct((N, 1, Dp), jnp.float32),
        grid=(N // nb,),
        in_specs=[
            pl.BlockSpec((nb, Sv, Dp), lambda i: (i, 0, 0)),
            pl.BlockSpec((nb, St_p, Dp), lambda i: (i, 0, 0)),
            pl.BlockSpec((nb, 1, St_p), lambda i: (i, 0, 0)),
            # Stacked per-layer QKV weights / biases (constant block index).
            pl.BlockSpec((3 * L, Dp, d_model), lambda i: (0, 0, 0)),
            pl.BlockSpec((3 * L, 1, d_model), lambda i: (0, 0, 0)),
        ],
        out_specs=pl.BlockSpec((nb, 1, Dp), lambda i: (i, 0, 0)),
        scratch_shapes=[pltpu.VMEM((nb, Sv, Dp), jnp.float32)],
        compiler_params=pltpu.CompilerParams(dimension_semantics=("parallel",)),
    )(hidden, text, ext_mask, w_fusion, b_fusion)


# ----------------------------------------------------------------------------
# Static parameter preparation (once, outside all kernels).
# ----------------------------------------------------------------------------
def prepare_params(params, lane=128):
    D = params["w_text_proj"].shape[0]
    Dp = _round_up(D, lane)

    def pad_cols(w):            # [Hin, D] -> [Hin, Dp] (zero lanes beyond D)
        return jnp.pad(w, ((0, 0), (0, Dp - D)))

    def pad_rows(w_torch):      # torch [D, D] -> [Dp, D] pre-transposed
        return jnp.pad(w_torch.T, ((0, Dp - D), (0, 0)))

    prep = {
        "text_emb": params["text_emb"],
        # text projection: embedding gather cannot be folded
        "w_text": pad_cols(params["w_text_proj"].T),
        # fold the static patch / frame embed matmuls into the projections:
        # removes one matmul per modality and the [N,S,H_plm] HBM intermediate.
        "w_image": pad_cols(params["w_patch"] @ params["w_image_proj"].T),
        "w_audio": pad_cols(params["w_frame"] @ params["w_audio_proj"].T),
        "dims": {"D": D, "Dp": Dp},
    }
    if params["fusion"]:
        w_layers, b_layers = [], []
        for p in params["fusion"]:
            w_layers += [pad_rows(p["wq"]), pad_rows(p["wk"]), pad_rows(p["wv"])]
            b_layers += [p["bq"][None, :], p["bk"][None, :], p["bv"][None, :]]
        prep["w_fusion"] = jnp.stack(w_layers, axis=0)   # [3L, Dp, D]
        prep["b_fusion"] = jnp.stack(b_layers, axis=0)   # [3L, 1, D]
    else:
        prep["w_fusion"] = None
        prep["b_fusion"] = None
    return prep


# ----------------------------------------------------------------------------
# Glue
# ----------------------------------------------------------------------------
def extended_attention_mask(mask_2d):
    # HF get_extended_attention_mask for a 2D mask, broadcast head dim dropped:
    # [N, S] -> [N, 1, S] additive.
    return (1.0 - mask_2d.astype(jnp.float32))[:, None, :] * jnp.finfo(jnp.float32).min


def global_encoder_forward(prep, text_inputs, image_inputs, audio_inputs,
                           num_heads, compute_dtype=jnp.float32):
    D = prep["dims"]["D"]
    input_ids = text_inputs["input_ids"]
    B, E, St = input_ids.shape
    ids = input_ids.reshape(-1, St)
    t_mask = text_inputs["attention_mask"].reshape(-1, St)

    # --- plm_extractor stubs (deterministic glue) ----------------------------
    # TODO(synk): plm_extractor.get_{text,image,audio}_features are full
    # pretrained transformers; replaced here by deterministic embedding /
    # patch / frame featurisers.
    text_feats = prep["text_emb"][ids]                                   # [N, St, Ht]

    pv = image_inputs["pixel_values"]
    _, _, _, C, Hh, Ww = pv.shape
    pv = pv.reshape(-1, C, Hh, Ww)
    n = pv.shape[0]
    patches = pv.reshape(n, C, Hh // 4, 4, Ww // 4, 4)
    patches = patches.transpose(0, 2, 4, 1, 3, 5).reshape(
        n, (Hh // 4) * (Ww // 4), C * 16)                                # [N, Si, C*16]

    av = audio_inputs["input_values"]
    La = av.shape[-1]
    frames = av.reshape(-1, La // 4, 4)                                  # [N, Sa, 4]

    # drop_emb is nn.Dropout -> identity in eval mode.
    text_features = linear_projection(text_feats, prep["w_text"])        # [N, St, Dp]
    image_features = linear_projection(patches, prep["w_image"])         # [N, Si, Dp]
    audio_features = linear_projection(frames, prep["w_audio"])          # [N, Sa, Dp]

    video_features = jnp.concatenate([image_features, audio_features], axis=1)

    # Pad the text (key/value) length to a lane multiple; padded positions get
    # the finfo.min additive mask so they contribute exactly zero probability.
    St_p = _round_up(St, 128)
    if St_p != St:
        text_features = jnp.pad(text_features, ((0, 0), (0, St_p - St), (0, 0)))
        t_mask = jnp.pad(t_mask, ((0, 0), (0, St_p - St)))
    text_ext = extended_attention_mask(t_mask)                           # [N, 1, St_p]
    # video_atts is built in the torch code, but BertSelfAttention cross-attn
    # uses encoder_attention_mask (text mask), so video_atts never affects the
    # returned utt_embed and is omitted.

    if prep["w_fusion"] is not None:
        cls = fusion_stack(video_features, text_features, text_ext,
                           prep["w_fusion"], prep["b_fusion"],
                           num_heads, D, compute_dtype)                  # [N, 1, Dp]
        utt_embed = cls[:, 0, :D]
    else:
        utt_embed = video_features[:, 0, :D]

    # hyper_text / cross_projection are computed in torch but do not feed the
    # returned utt_embed, so they are omitted.
    return utt_embed.reshape(B, E, -1)


# ----------------------------------------------------------------------------
# Pure-JAX reference (unfused, unpadded) for verification
# ----------------------------------------------------------------------------
def ref_forward(params, text_inputs, image_inputs, audio_inputs, num_heads):
    input_ids = text_inputs["input_ids"]
    B, E, St = input_ids.shape
    ids = input_ids.reshape(-1, St)
    t_mask = text_inputs["attention_mask"].reshape(-1, St)

    text_feats = params["text_emb"][ids]
    pv = image_inputs["pixel_values"]
    _, _, _, C, Hh, Ww = pv.shape
    pv = pv.reshape(-1, C, Hh, Ww)
    n = pv.shape[0]
    patches = pv.reshape(n, C, Hh // 4, 4, Ww // 4, 4).transpose(0, 2, 4, 1, 3, 5)
    patches = patches.reshape(n, (Hh // 4) * (Ww // 4), C * 16)
    image_feats = patches @ params["w_patch"]
    av = audio_inputs["input_values"]
    La = av.shape[-1]
    av = av.reshape(-1, La)
    audio_feats = av.reshape(av.shape[0], La // 4, 4) @ params["w_frame"]

    text_features = text_feats @ params["w_text_proj"].T
    image_features = image_feats @ params["w_image_proj"].T
    audio_features = audio_feats @ params["w_audio_proj"].T

    hidden = jnp.concatenate([image_features, audio_features], axis=1)
    ext = (1.0 - t_mask.astype(jnp.float32))[:, None, None, :] * jnp.finfo(jnp.float32).min

    N, Sv, Dm = hidden.shape
    hd = Dm // num_heads
    for p in params["fusion"]:
        q = hidden @ p["wq"].T + p["bq"]
        k = text_features @ p["wk"].T + p["bk"]
        v = text_features @ p["wv"].T + p["bv"]
        q = q.reshape(N, Sv, num_heads, hd).transpose(0, 2, 1, 3)
        k = k.reshape(N, -1, num_heads, hd).transpose(0, 2, 1, 3)
        v = v.reshape(N, -1, num_heads, hd).transpose(0, 2, 1, 3)
        s = jnp.einsum("bhqd,bhkd->bhqk", q, k) / math.sqrt(hd) + ext
        pr = jax.nn.softmax(s, axis=-1)
        hidden = jnp.einsum("bhqk,bhkd->bhqd", pr, v).transpose(0, 2, 1, 3).reshape(N, Sv, Dm)
    return hidden[:, 0, :].reshape(B, E, -1)


# ----------------------------------------------------------------------------
if __name__ == "__main__":
    B, E, St, D = 2, 2, 8, 32          # batch, max_edu_num, max_tok_len, modal_proj_dim
    H_text, H_vis, H_aud = 48, 40, 56  # PLM hidden sizes
    C, Himg, Wimg = 3, 8, 8
    La = 16                            # audio_max_tok_len
    NH, NLAYERS = 4, 2                 # modal_inter_heads, modal_inter_layers
    VOCAB = 32

    key = jax.random.PRNGKey(0)
    keys = jax.random.split(key, 16)
    sc = 0.02
    params = {
        "text_emb":     sc * jax.random.normal(keys[0], (VOCAB, H_text), jnp.float32),
        "w_patch":      sc * jax.random.normal(keys[1], (C * 16, H_vis), jnp.float32),
        "w_frame":      sc * jax.random.normal(keys[2], (4, H_aud), jnp.float32),
        "w_text_proj":  sc * jax.random.normal(keys[3], (D, H_text), jnp.float32),
        "w_image_proj": sc * jax.random.normal(keys[4], (D, H_vis), jnp.float32),
        "w_audio_proj": sc * jax.random.normal(keys[5], (D, H_aud), jnp.float32),
        "fusion": [],
    }
    for l in range(NLAYERS):
        lk = jax.random.split(keys[6 + l], 6)
        params["fusion"].append({
            "wq": sc * jax.random.normal(lk[0], (D, D), jnp.float32),
            "bq": sc * jax.random.normal(lk[1], (D,), jnp.float32),
            "wk": sc * jax.random.normal(lk[2], (D, D), jnp.float32),
            "bk": sc * jax.random.normal(lk[3], (D,), jnp.float32),
            "wv": sc * jax.random.normal(lk[4], (D, D), jnp.float32),
            "bv": sc * jax.random.normal(lk[5], (D,), jnp.float32),
        })

    input_ids = jax.random.randint(keys[8], (B, E, St), 0, VOCAB)
    tok_pos = jnp.arange(St)[None, None, :]
    valid_len = jnp.array([[8, 6], [7, 5]])[:, :, None]
    text_mask = (tok_pos < valid_len).astype(jnp.int32)                       # [B,E,St]
    pixel_values = jax.random.normal(keys[9], (B, E, 1, C, Himg, Wimg), jnp.float32)
    audio_values = jax.random.normal(keys[10], (B, E, La), jnp.float32)
    audio_mask = jnp.ones((B, E, La), jnp.int32)

    text_inputs = {"input_ids": input_ids, "attention_mask": text_mask}
    image_inputs = {"pixel_values": pixel_values}
    audio_inputs = {"input_values": audio_values, "attention_mask": audio_mask}

    prep = prepare_params(params)
    utt = global_encoder_forward(prep, text_inputs, image_inputs, audio_inputs, NH)
    utt = jax.block_until_ready(utt)
    assert utt.shape == (B, E, D)

    ref = ref_forward(params, text_inputs, image_inputs, audio_inputs, NH)
    # Slightly loose: the folded (pre-multiplied) projection weights
    # reassociate one f32 matmul.
    np.testing.assert_allclose(np.asarray(utt), np.asarray(ref), rtol=2e-4, atol=2e-5)

    print("KERNEL_OK")
</pallas_src>

<mosaic_0001>
module attributes {stable_mosaic.version = 11 : i64} {
  func.func @_proj_kernel(%arg0: i32, %arg1: memref<32x48xf32, #tpu.memory_space<vmem>>, %arg2: memref<48x128xf32, #tpu.memory_space<vmem>>, %arg3: memref<32x128xf32, #tpu.memory_space<vmem>>) attributes {dimension_semantics = [#tpu.dimension_semantics<parallel>], iteration_bounds = array<i64: 1>, scalar_prefetch = 0 : i64, scratch_operands = 0 : i64, tpu.core_type = #tpu.core_type<tc>, window_params = [{transform_indices = @transform_0, window_bounds = array<i64: 32, 48>}, {pipeline_mode = #tpu.pipeline_mode<synchronous>, transform_indices = @transform_1, window_bounds = array<i64: 48, 128>}, {transform_indices = @transform_2, window_bounds = array<i64: 32, 128>}]} {
    %c0 = arith.constant 0 : index
    %c0_0 = arith.constant 0 : index
    %0 = vector.load %arg1[%c0, %c0_0] : memref<32x48xf32, #tpu.memory_space<vmem>>, vector<32x48xf32>
    %c0_1 = arith.constant 0 : index
    %c0_2 = arith.constant 0 : index
    %1 = vector.load %arg2[%c0_1, %c0_2] : memref<48x128xf32, #tpu.memory_space<vmem>>, vector<48x128xf32>
    %cst = arith.constant dense<0.000000e+00> : vector<32x128xf32>
    %2 = tpu.matmul %0, %1, %cst {dimension_numbers = #tpu.dot_dimension_numbers<[1], [0], [0], [1], [0, 0, 1, 1], [], []>} : vector<32x48xf32>, vector<48x128xf32>, vector<32x128xf32> -> vector<32x128xf32>
    %c0_3 = arith.constant 0 : index
    %c0_4 = arith.constant 0 : index
    %3 = vector.load %arg3[%c0_3, %c0_4] : memref<32x128xf32, #tpu.memory_space<vmem>>, vector<32x128xf32>
    tpu.vector_store %arg3[%c0_3, %c0_4], %2 {strides = array<i32>} : memref<32x128xf32, #tpu.memory_space<vmem>>, vector<32x128xf32>,
    return
  }
  func.func @transform_0(%arg0: i32) -> (i32, i32) {
    %c0_i32 = arith.constant 0 : i32
    %c0_i32_0 = arith.constant 0 : i32
    return %arg0, %c0_i32 : i32, i32
  }
  func.func @transform_1(%arg0: i32) -> (i32, i32) {
    %c0_i32 = arith.constant 0 : i32
    %c0_i32_0 = arith.constant 0 : i32
    %c0_i32_1 = arith.constant 0 : i32
    return %c0_i32, %c0_i32_0 : i32, i32
  }
  func.func @transform_2(%arg0: i32) -> (i32, i32) {
    %c0_i32 = arith.constant 0 : i32
    %c0_i32_0 = arith.constant 0 : i32
    return %arg0, %c0_i32 : i32, i32
  }
}

</mosaic_0001>

<bundles_post_ra>
// kernel: tpu_custom_call.1
= control target key start
LH: loop header
LB: loop body
LE: loop exit
PB: predicated region body
PF: predicated region fallthrough
CT: control target
= control target key end

     0   :  { %7 = vsyncpa [#allocation3], 0  ;;  %s263_s0 = inlined_call_operand.hbm [shape: f32[32,48], index: 0, kind: input, shape index: {}]   ;;  %s264_s1 = inlined_call_operand.hbm [shape: f32[48,128], index: 1, kind: input, shape index: {}]   ;;  %s265_s2 = inlined_call_operand.hbm [shape: f32[32,128], index: 2, kind: output, shape index: {}]  }
   0x1   :  { %8 = vsyncpa [#allocation6], 0 }
   0x2   :  { %9 = vsyncpa [#allocation4], 0  ;;  %s14_s11 = sshll.u32 %s263_s0, 4  ;;  %s225_s12 = smov [#allocation2]   ;;  %s15_s11 = int_to_ptr.hbm [resolvable:$true] %s14_s11 }
   0x3   :  { %s16_s13 = sshll.u32 %s225_s12, 4  ;;  %s27_s16 = sshll.u32 %s264_s1, 4  ;;  %s17_s13 = int_to_ptr.vmem [resolvable:$true] %s16_s13  ;;  %s28_s16 = int_to_ptr.hbm [resolvable:$true] %s27_s16 }
   0x4   :  { %s226_s17 = smov 128   ;;  %s227_s18 = smov 8  }
   0x5   :  { %22 = dma.hbm_to_vmem [thread:$0]  %s15_s11, 512, %s17_s13, [#allocation3], %s226_s17, %s226_s17, %s227_s18  }
   0x6   :  { %s228_s19 = smov [#allocation5]  }
   0x7   :  { %s29_s20 = sshll.u32 %s228_s19, 4  ;;  %s30_s20 = int_to_ptr.vmem [resolvable:$true] %s29_s20 }
   0x8   :  { %35 = dma.hbm_to_vmem [thread:$0]  %s28_s16, 768, %s30_s20, [#allocation6], %s226_s17, %s226_s17, %s227_s18  }
   0x9   :  { %219 = dma.done.wait [#allocation3], 512  }
   0xa   :  { %220 = vsyncadd [#allocation3], 4294966784 }
   0xb   :  { %221 = dma.done.wait [#allocation6], 768  }
   0xc   :  { %222 = vsyncadd [#allocation6], 4294966528  ;;  %v53_v0 = vld [vmem:[#allocation5 + $0x28] sm:$0xff]  ;;  %v52_v1 = vld [vmem:[#allocation5 + $0x20] sm:$0xff]  ;;  %vm54_vm0 = vcmask 392192   ;;  %s229_s0 = smov [#allocation7]  }
   0xd   :  { %125 = vmatpush.msra.mxu2 %v53_v0  ;;  %126 = vmatpush.msra.mxu3 %v53_v0  ;;  %v51_v2 = vld [vmem:[#allocation5 + $0x18] sm:$0xff]  ;;  %v50_v3 = vld [vmem:[#allocation5 + $0x10] sm:$0xff]  ;;  %v49_v4 = vld [vmem:[#allocation5 + $0x8] sm:$0xff]  ;;  %s104_s1 = sshll.u32 %s229_s0, 4  ;;  %s106_s23 = sshll.u32 %s265_s2, 4  ;;  %s105_s1 = int_to_ptr.vmem [resolvable:$true] %s104_s1  ;;  %s107_s23 = int_to_ptr.hbm [resolvable:$true] %s106_s23 }
   0xe   :  { %77 = vmatpush.msra.mxu0 %v53_v0  ;;  %124 = vmatpush.msra.mxu1 %v53_v0  ;;  %v48_v5 = vld [vmem:[#allocation5] sm:$0xff]  ;;  %v46_v6 = vld [vmem:[#allocation2 + $0x10] sm:$0xff]  ;;  %v47_v7 = vld [vmem:[#allocation2 + $0x18] sm:$0xff] }
   0xf   :  { %128 = vmatpush.msra.mxu2 %v52_v1  ;;  %129 = vmatpush.msra.mxu3 %v52_v1  ;;  %v44_v8 = vld [vmem:[#allocation2] sm:$0xff]  ;;  %v45_v9 = vld [vmem:[#allocation2 + $0x8] sm:$0xff] }
  0x10   :  { %78 = vmatpush.msra.mxu0 %v52_v1  ;;  %127 = vmatpush.msra.mxu1 %v52_v1 }
  0x11   :  { %131 = vmatpush.msra.mxu2 %v51_v2  ;;  %132 = vmatpush.msra.mxu3 %v51_v2 }
  0x12   :  { %79 = vmatpush.msra.mxu0 %v51_v2  ;;  %130 = vmatpush.msra.mxu1 %v51_v2 }
  0x13   :  { %134 = vmatpush.msra.mxu2 %v50_v3  ;;  %135 = vmatpush.msra.mxu3 %v50_v3 }
  0x14   :  { %80 = vmatpush.msra.mxu0 %v50_v3  ;;  %133 = vmatpush.msra.mxu1 %v50_v3 }
  0x15   :  { %137 = vmatpush.msra.mxu2 %v49_v4  ;;  %138 = vmatpush.msra.mxu3 %v49_v4 }
  0x16   :  { %81 = vmatpush.msra.mxu0 %v49_v4  ;;  %136 = vmatpush.msra.mxu1 %v49_v4 }
  0x17   :  { %140 = vmatpush.msra.mxu2 %v48_v5  ;;  %141 = vmatpush.msra.mxu3 %v48_v5 }
  0x18   :  { %122 = vmatmul.msk.f32.vlgmr.msra.gmra.mxu2 %vm54_vm0, %v46_v6  ;;  %123 = vmatmul.msk.f32.vlgmr.msra.gmra.mxu3 %vm54_vm0, %v47_v7 }
  0x19   :  { %82 = vmatpush.msra.mxu0 %v48_v5  ;;  %139 = vmatpush.msra.mxu1 %v48_v5 }
  0x1a   :  { %120 = vmatmul.msk.f32.vlgmr.msra.gmra.mxu0 %vm54_vm0, %v44_v8  ;;  %121 = vmatmul.msk.f32.vlgmr.msra.gmra.mxu1 %vm54_vm0, %v45_v9 }
  0x97   :  { %v84_v10 = vpop.f32.mrf.mxu0  ;;  %v87_v11 = vpop.f32.mrf.mxu1 }
  0x98   :  { %96 = vst [vmem:[#allocation7] sm:$0xff] %v84_v10 }
  0x99   :  { %97 = vst [vmem:[#allocation7 + $0x8] sm:$0xff] %v87_v11 }
  0x9b   :  { %v90_v12 = vpop.f32.mrf.mxu2  ;;  %v93_v13 = vpop.f32.mrf.mxu3 }
  0x9c   :  { %98 = vst [vmem:[#allocation7 + $0x10] sm:$0xff] %v90_v12 }
  0x9d   :  { %99 = vst [vmem:[#allocation7 + $0x18] sm:$0xff] %v93_v13 }
  0x9e   :  { %112 = dma.vmem_to_hbm [thread:$0]  %s105_s1, 512, %s107_s23, [#allocation4], %s226_s17, %s226_s17, %s227_s18  }
  0x9f   :  { %223 = dma.done.wait [#allocation4], 512  }
  0xa0   :  { %224 = vsyncadd [#allocation4], 4294966784 }
  0xa1   :  { %117 = vsyncpa [#allocation3], 1 }
  0xa2   :  { %118 = vsyncpa [#allocation6], 1 }
  0xa3   :  { %119 = vsyncpa [#allocation4], 1 }

</bundles_post_ra>
